<compile_context>
chip_gen: v7x
topology: tpu7x:2x2x1
jax: 0.10.0
libtpu: 0.0.40
codegen_flags: <defaults>
</compile_context>

<pallas_src>
import math

import jax
import jax.numpy as jnp
from jax import lax
from jax.experimental import pallas as pl
from jax.experimental.pallas import tpu as pltpu


def _round_up(a: int, b: int) -> int:
    return (a + b - 1) // b * b


# Block-residency target that fits every generation (v7x has 64 MiB physical /
# 32 MiB default scoped VMEM per TensorCore; v5e/v6e have 128 MiB).
_VMEM_BUDGET = 48 * 1024 * 1024


def _mlp_kernel(x_ref, w1_ref, b1_ref, w2_ref, b2_ref, o_ref, h_ref):
    # Grid = (row tiles i, out-feature tiles j); j is the inner axis.
    # The hidden activation for this row tile is computed once (j == 0) into a
    # persistent VMEM scratch and reused for every output-feature tile.
    @pl.when(pl.program_id(1) == 0)
    def _():
        # First linear: (tm, in) @ (in, hid_pad), f32 accumulation on MXU.
        # x is cast to the MXU dtype here (no wrapper-side HBM copy of x).
        h = jnp.dot(x_ref[...].astype(w1_ref.dtype), w1_ref[...],
                    preferred_element_type=jnp.float32)
        h = h + b1_ref[...]  # bias kept in f32

        # Exact GELU (torch nn.GELU default, erf formulation), in f32.
        # TODO(synk): switch to tanh-approx (EUP slot) only if profiling shows
        # the VALU slot binding while the MXU has slack; it changes numerics.
        h = 0.5 * h * (1.0 + lax.erf(h * (1.0 / math.sqrt(2.0))))

        # Dropout(p=0.0) is the identity -> nothing to do.
        # TODO(synk): for dropout p > 0, build the mask in-kernel with
        # pltpu.prng_seed + pltpu.prng_random_bits.
        h_ref[...] = h.astype(h_ref.dtype)

    # Second linear on the cached hidden tile: (tm, hid_pad) @ (hid_pad, tn).
    y = jnp.dot(h_ref[...], w2_ref[...], preferred_element_type=jnp.float32)
    o_ref[...] = (y + b2_ref[...]).astype(o_ref.dtype)


def prepare_mlp_params(w1, b1, w2, b2, *, compute_dtype=jnp.bfloat16):
    """One-time (init-style) padding + cast of the MLP parameters.

    Feature dims are zero-padded to multiples of 128 (lane-dense `vst` stores),
    weights cast to the MXU dtype, biases kept in f32.  Zero padding rows/cols
    does not change the math.  Doing this once keeps per-call HBM traffic
    limited to x and the output.
    """
    in_feat, hid_feat = w1.shape
    out_feat = w2.shape[1]
    hid_pad = _round_up(hid_feat, 128)
    out_pad = _round_up(out_feat, 128)

    w1p = w1 if hid_pad == hid_feat else jnp.pad(w1, ((0, 0), (0, hid_pad - hid_feat)))
    b1p = b1 if hid_pad == hid_feat else jnp.pad(b1, (0, hid_pad - hid_feat))
    if hid_pad == hid_feat and out_pad == out_feat:
        w2p = w2
    else:
        w2p = jnp.pad(w2, ((0, hid_pad - hid_feat), (0, out_pad - out_feat)))
    b2p = b2 if out_pad == out_feat else jnp.pad(b2, (0, out_pad - out_feat))

    return dict(
        w1=w1p.astype(compute_dtype),
        b1=b1p.reshape(1, hid_pad).astype(jnp.float32),
        w2=w2p.astype(compute_dtype),
        b2=b2p.reshape(1, out_pad).astype(jnp.float32),
        in_feat=in_feat, hid_feat=hid_feat, out_feat=out_feat,
        hid_pad=hid_pad, out_pad=out_pad,
    )


def mlp_pallas(x, params, *, tm=512, tn=512, out_dtype=None):
    """x: (B, S, in_feat).  params: output of prepare_mlp_params().

    out_dtype: output dtype (default x.dtype; pass jnp.bfloat16 to halve output
    writeback / vector-store pressure if downstream consumers accept it).
    """
    B, S, in_feat = x.shape
    assert in_feat == params["in_feat"]
    hid_pad, out_pad = params["hid_pad"], params["out_pad"]
    out_feat = params["out_feat"]
    w1p, b1p, w2p, b2p = params["w1"], params["b1"], params["w2"], params["b2"]
    compute_dtype = w1p.dtype
    out_dtype = x.dtype if out_dtype is None else out_dtype

    M = B * S
    x2d = x.reshape(M, in_feat)  # no pad, no cast: wrapper adds zero HBM passes

    # Row tile: multiple of 16 (bf16 sublane packing), never larger than needed,
    # and >= 2 tiles whenever M allows so v7x's two TensorCores both get work.
    tm_eff = max(16, min(_round_up(tm, 16), _round_up(M, 16)))
    if M >= 32 and pl.cdiv(M, tm_eff) < 2:
        tm_eff = max(16, _round_up(pl.cdiv(M, 2), 16))

    # Output-feature tile: multiple of 128, capped by the padded width.
    tn_eff = max(128, min(_round_up(tn, 128), out_pad))

    xb = x2d.dtype.itemsize
    cb = jnp.dtype(compute_dtype).itemsize
    ob = jnp.dtype(out_dtype).itemsize

    def vmem_need(tm_, tn_):
        nj_ = pl.cdiv(out_pad, tn_)
        w2_bufs = 1 if nj_ == 1 else 2          # streamed when tiled along N
        return (2 * tm_ * in_feat * xb          # x tile (double-buffered)
                + in_feat * hid_pad * cb        # w1 (single-buffered)
                + hid_pad * 4                   # b1
                + w2_bufs * hid_pad * tn_ * cb  # w2
                + w2_bufs * tn_ * 4             # b2
                + 2 * tm_ * tn_ * ob            # out tile (double-buffered)
                + tm_ * hid_pad * cb)           # hidden scratch

    # Shrink tiles until block residency fits the cross-generation budget.
    while vmem_need(tm_eff, tn_eff) > _VMEM_BUDGET and (tm_eff > 16 or tn_eff > 128):
        if tm_eff > 16:
            tm_eff = max(16, _round_up(tm_eff // 2, 16))
        else:
            tn_eff = max(128, tn_eff // 2)

    ni = pl.cdiv(M, tm_eff)
    nj = pl.cdiv(out_pad, tn_eff)

    need = vmem_need(tm_eff, tn_eff)
    vmem_limit = min(max(int(need * 1.25) + (8 << 20), 32 << 20), 56 << 20)

    cost = pl.CostEstimate(
        flops=2 * M * (in_feat * hid_pad + hid_pad * out_pad),
        transcendentals=M * hid_pad,  # erf
        bytes_accessed=(M * in_feat * xb + w1p.size * cb + w2p.size * cb
                        + (hid_pad + out_pad) * 4 + M * out_pad * ob),
    )

    def build(single_buffer_weights):
        def const_spec(shape, imap):
            # Constant index_map -> single buffer (halves resident weight VMEM).
            if single_buffer_weights:
                return pl.BlockSpec(shape, imap, pipeline_mode=pl.Buffered(1))
            return pl.BlockSpec(shape, imap)

        # w2/b2 vary with j, so only single-buffer them when there is one N tile.
        stream_spec = const_spec if nj == 1 else pl.BlockSpec

        grid_spec = pltpu.PrefetchScalarGridSpec(
            num_scalar_prefetch=0,
            grid=(ni, nj),
            in_specs=[
                pl.BlockSpec((tm_eff, in_feat), lambda i, j: (i, 0)),
                const_spec((in_feat, hid_pad), lambda i, j: (0, 0)),
                const_spec((1, hid_pad), lambda i, j: (0, 0)),
                stream_spec((hid_pad, tn_eff), lambda i, j: (0, j)),
                stream_spec((1, tn_eff), lambda i, j: (0, j)),
            ],
            out_specs=pl.BlockSpec((tm_eff, tn_eff), lambda i, j: (i, j)),
            scratch_shapes=[pltpu.VMEM((tm_eff, hid_pad), compute_dtype)],
        )
        return pl.pallas_call(
            _mlp_kernel,
            out_shape=jax.ShapeDtypeStruct((M, out_pad), out_dtype),
            grid_spec=grid_spec,
            compiler_params=pltpu.CompilerParams(
                # Rows are independent -> "parallel" (megacore-shardable).
                # j must be "arbitrary": the hidden scratch written at j == 0
                # is reused by later j tiles of the same row block.
                dimension_semantics=("parallel", "arbitrary"),
                vmem_limit_bytes=vmem_limit,
            ),
            cost_estimate=cost,
        )

    try:
        out2d = build(True)(x2d, w1p, b1p, w2p, b2p)
    except Exception:
        # Safety net only: if this JAX build rejects pipeline_mode=pl.Buffered(1),
        # fall back to default double-buffered resident weights (known-good path).
        out2d = build(False)(x2d, w1p, b1p, w2p, b2p)

    if out_pad != out_feat:
        out2d = out2d[:, :out_feat]
    return out2d.reshape(B, S, out_feat)


def mlp_reference(x, w1, b1, w2, b2):
    h = jnp.einsum("bsc,ch->bsh", x, w1) + b1
    h = 0.5 * h * (1.0 + lax.erf(h / math.sqrt(2.0)))
    return jnp.einsum("bsh,ho->bso", h, w2) + b2


if __name__ == "__main__":
    # Small shapes consistent with the module: batch=2, seq=8, in=32, hid=64, out=32.
    B, S = 2, 8
    in_feat, hid_feat, out_feat = 32, 64, 32

    key = jax.random.PRNGKey(0)
    kx, kw1, kb1, kw2, kb2 = jax.random.split(key, 5)

    x = jax.random.normal(kx, (B, S, in_feat), dtype=jnp.float32)

    # Deterministic parameter init (torch nn.Linear-style uniform bounds).
    lim1 = 1.0 / math.sqrt(in_feat)
    lim2 = 1.0 / math.sqrt(hid_feat)
    w1 = jax.random.uniform(kw1, (in_feat, hid_feat), jnp.float32, -lim1, lim1)
    b1 = jax.random.uniform(kb1, (hid_feat,), jnp.float32, -lim1, lim1)
    w2 = jax.random.uniform(kw2, (hid_feat, out_feat), jnp.float32, -lim2, lim2)
    b2 = jax.random.uniform(kb2, (out_feat,), jnp.float32, -lim2, lim2)

    ref = mlp_reference(x, w1, b1, w2, b2)

    # Exact f32 MXU path: tight check against the erf-GELU reference.
    params_f32 = prepare_mlp_params(w1, b1, w2, b2, compute_dtype=jnp.float32)
    out_f32 = jax.block_until_ready(mlp_pallas(x, params_f32))
    assert out_f32.shape == (B, S, out_feat)
    assert jnp.allclose(out_f32, ref, atol=1e-5, rtol=1e-5), "f32 mismatch vs reference"

    # Default bf16-matmul / f32-accumulate path: relaxed tolerance.
    params_bf16 = prepare_mlp_params(w1, b1, w2, b2, compute_dtype=jnp.bfloat16)
    out_bf16 = jax.block_until_ready(mlp_pallas(x, params_bf16))
    assert out_bf16.shape == (B, S, out_feat)
    assert jnp.allclose(out_bf16, ref, atol=5e-2, rtol=5e-2), "bf16 mismatch vs reference"

    print("KERNEL_OK")
</pallas_src>

<mosaic_0001>
module attributes {stable_mosaic.version = 11 : i64} {
  func.func @_mlp_kernel(%arg0: i32, %arg1: i32, %arg2: memref<16x32xf32, #tpu.memory_space<vmem>>, %arg3: memref<32x128xf32, #tpu.memory_space<vmem>>, %arg4: memref<1x128xf32, #tpu.memory_space<vmem>>, %arg5: memref<128x128xf32, #tpu.memory_space<vmem>>, %arg6: memref<1x128xf32, #tpu.memory_space<vmem>>, %arg7: memref<16x128xf32, #tpu.memory_space<vmem>>, %arg8: memref<16x128xf32, #tpu.memory_space<vmem>>) attributes {dimension_semantics = [#tpu.dimension_semantics<parallel>, #tpu.dimension_semantics<arbitrary>], iteration_bounds = array<i64: 1, 1>, scalar_prefetch = 0 : i64, scratch_operands = 1 : i64, tpu.core_type = #tpu.core_type<tc>, window_params = [{transform_indices = @transform_0, window_bounds = array<i64: 16, 32>}, {pipeline_mode = #tpu.pipeline_mode<synchronous>, transform_indices = @transform_1, window_bounds = array<i64: 32, 128>}, {pipeline_mode = #tpu.pipeline_mode<synchronous>, transform_indices = @transform_2, window_bounds = array<i64: 1, 128>}, {pipeline_mode = #tpu.pipeline_mode<synchronous>, transform_indices = @transform_3, window_bounds = array<i64: 128, 128>}, {pipeline_mode = #tpu.pipeline_mode<synchronous>, transform_indices = @transform_4, window_bounds = array<i64: 1, 128>}, {transform_indices = @transform_5, window_bounds = array<i64: 16, 128>}]} {
    %c0_i32 = arith.constant 0 : i32
    %0 = arith.cmpi eq, %arg1, %c0_i32 : i32
    %1 = arith.extui %0 : i1 to i32
    %c0_i32_0 = arith.constant 0 : i32
    %2 = arith.cmpi ne, %1, %c0_i32_0 : i32
    scf.if %2 {
      %c0_8 = arith.constant 0 : index
      %c0_9 = arith.constant 0 : index
      %10 = vector.load %arg2[%c0_8, %c0_9] : memref<16x32xf32, #tpu.memory_space<vmem>>, vector<16x32xf32>
      %c0_10 = arith.constant 0 : index
      %c0_11 = arith.constant 0 : index
      %11 = vector.load %arg3[%c0_10, %c0_11] : memref<32x128xf32, #tpu.memory_space<vmem>>, vector<32x128xf32>
      %cst_12 = arith.constant dense<0.000000e+00> : vector<16x128xf32>
      %12 = tpu.matmul %10, %11, %cst_12 {dimension_numbers = #tpu.dot_dimension_numbers<[1], [0], [0], [1], [0, 0, 1, 1], [], []>} : vector<16x32xf32>, vector<32x128xf32>, vector<16x128xf32> -> vector<16x128xf32>
      %c0_13 = arith.constant 0 : index
      %c0_14 = arith.constant 0 : index
      %13 = vector.load %arg4[%c0_13, %c0_14] : memref<1x128xf32, #tpu.memory_space<vmem>>, vector<1x128xf32>
      %14 = vector.broadcast %13 : vector<1x128xf32> to vector<16x128xf32>
      %15 = arith.addf %12, %14 : vector<16x128xf32>
      %cst_15 = arith.constant 5.000000e-01 : f32
      %16 = vector.broadcast %cst_15 : f32 to vector<16x128xf32>
      %17 = arith.mulf %16, %15 : vector<16x128xf32>
      %cst_16 = arith.constant 0.707106769 : f32
      %18 = vector.broadcast %cst_16 : f32 to vector<16x128xf32>
      %19 = arith.mulf %15, %18 : vector<16x128xf32>
      %20 = math.erf %19 : vector<16x128xf32>
      %cst_17 = arith.constant 1.000000e+00 : f32
      %21 = vector.broadcast %cst_17 : f32 to vector<16x128xf32>
      %22 = arith.addf %21, %20 : vector<16x128xf32>
      %23 = arith.mulf %17, %22 : vector<16x128xf32>
      %c0_18 = arith.constant 0 : index
      %c0_19 = arith.constant 0 : index
      %24 = vector.load %arg8[%c0_18, %c0_19] : memref<16x128xf32, #tpu.memory_space<vmem>>, vector<16x128xf32>
      tpu.vector_store %arg8[%c0_18, %c0_19], %23 {strides = array<i32>} : memref<16x128xf32, #tpu.memory_space<vmem>>, vector<16x128xf32>,
    } else {
    }
    %c0 = arith.constant 0 : index
    %c0_1 = arith.constant 0 : index
    %3 = vector.load %arg8[%c0, %c0_1] : memref<16x128xf32, #tpu.memory_space<vmem>>, vector<16x128xf32>
    %c0_2 = arith.constant 0 : index
    %c0_3 = arith.constant 0 : index
    %4 = vector.load %arg5[%c0_2, %c0_3] : memref<128x128xf32, #tpu.memory_space<vmem>>, vector<128x128xf32>
    %cst = arith.constant dense<0.000000e+00> : vector<16x128xf32>
    %5 = tpu.matmul %3, %4, %cst {dimension_numbers = #tpu.dot_dimension_numbers<[1], [0], [0], [1], [0, 0, 1, 1], [], []>} : vector<16x128xf32>, vector<128x128xf32>, vector<16x128xf32> -> vector<16x128xf32>
    %c0_4 = arith.constant 0 : index
    %c0_5 = arith.constant 0 : index
    %6 = vector.load %arg6[%c0_4, %c0_5] : memref<1x128xf32, #tpu.memory_space<vmem>>, vector<1x128xf32>
    %7 = vector.broadcast %6 : vector<1x128xf32> to vector<16x128xf32>
    %8 = arith.addf %5, %7 : vector<16x128xf32>
    %c0_6 = arith.constant 0 : index
    %c0_7 = arith.constant 0 : index
    %9 = vector.load %arg7[%c0_6, %c0_7] : memref<16x128xf32, #tpu.memory_space<vmem>>, vector<16x128xf32>
    tpu.vector_store %arg7[%c0_6, %c0_7], %8 {strides = array<i32>} : memref<16x128xf32, #tpu.memory_space<vmem>>, vector<16x128xf32>,
    return
  }
  func.func @transform_0(%arg0: i32, %arg1: i32) -> (i32, i32) {
    %c0_i32 = arith.constant 0 : i32
    %c0_i32_0 = arith.constant 0 : i32
    return %arg0, %c0_i32 : i32, i32
  }
  func.func @transform_1(%arg0: i32, %arg1: i32) -> (i32, i32) {
    %c0_i32 = arith.constant 0 : i32
    %c0_i32_0 = arith.constant 0 : i32
    %c0_i32_1 = arith.constant 0 : i32
    return %c0_i32, %c0_i32_0 : i32, i32
  }
  func.func @transform_2(%arg0: i32, %arg1: i32) -> (i32, i32) {
    %c0_i32 = arith.constant 0 : i32
    %c0_i32_0 = arith.constant 0 : i32
    %c0_i32_1 = arith.constant 0 : i32
    return %c0_i32, %c0_i32_0 : i32, i32
  }
  func.func @transform_3(%arg0: i32, %arg1: i32) -> (i32, i32) {
    %c0_i32 = arith.constant 0 : i32
    %c0_i32_0 = arith.constant 0 : i32
    return %c0_i32, %arg1 : i32, i32
  }
  func.func @transform_4(%arg0: i32, %arg1: i32) -> (i32, i32) {
    %c0_i32 = arith.constant 0 : i32
    %c0_i32_0 = arith.constant 0 : i32
    return %c0_i32, %arg1 : i32, i32
  }
  func.func @transform_5(%arg0: i32, %arg1: i32) -> (i32, i32) {
    %c0_i32 = arith.constant 0 : i32
    return %arg0, %arg1 : i32, i32
  }
}

module attributes {stable_mosaic.version = 11 : i64} {
  func.func @_mlp_kernel(%arg0: i32, %arg1: i32, %arg2: memref<16x32xf32, #tpu.memory_space<vmem>>, %arg3: memref<32x128xf32, #tpu.memory_space<vmem>>, %arg4: memref<1x128xf32, #tpu.memory_space<vmem>>, %arg5: memref<128x128xf32, #tpu.memory_space<vmem>>, %arg6: memref<1x128xf32, #tpu.memory_space<vmem>>, %arg7: memref<16x128xf32, #tpu.memory_space<vmem>>, %arg8: memref<16x128xf32, #tpu.memory_space<vmem>>) attributes {dimension_semantics = [#tpu.dimension_semantics<parallel>, #tpu.dimension_semantics<arbitrary>], iteration_bounds = array<i64: 1, 1>, scalar_prefetch = 0 : i64, scratch_operands = 1 : i64, tpu.core_type = #tpu.core_type<tc>, window_params = [{transform_indices = @transform_0, window_bounds = array<i64: 16, 32>}, {pipeline_mode = #tpu.pipeline_mode<synchronous>, transform_indices = @transform_1, window_bounds = array<i64: 32, 128>}, {pipeline_mode = #tpu.pipeline_mode<synchronous>, transform_indices = @transform_2, window_bounds = array<i64: 1, 128>}, {transform_indices = @transform_3, window_bounds = array<i64: 128, 128>}, {transform_indices = @transform_4, window_bounds = array<i64: 1, 128>}, {transform_indices = @transform_5, window_bounds = array<i64: 16, 128>}]} {
    %c0_i32 = arith.constant 0 : i32
    %0 = arith.cmpi eq, %arg1, %c0_i32 : i32
    %1 = arith.extui %0 : i1 to i32
    %c0_i32_0 = arith.constant 0 : i32
    %2 = arith.cmpi ne, %1, %c0_i32_0 : i32
    scf.if %2 {
      %c0_8 = arith.constant 0 : index
      %c0_9 = arith.constant 0 : index
      %10 = vector.load %arg2[%c0_8, %c0_9] : memref<16x32xf32, #tpu.memory_space<vmem>>, vector<16x32xf32>
      %c0_10 = arith.constant 0 : index
      %c0_11 = arith.constant 0 : index
      %11 = vector.load %arg3[%c0_10, %c0_11] : memref<32x128xf32, #tpu.memory_space<vmem>>, vector<32x128xf32>
      %cst_12 = arith.constant dense<0.000000e+00> : vector<16x128xf32>
      %12 = tpu.matmul %10, %11, %cst_12 {dimension_numbers = #tpu.dot_dimension_numbers<[1], [0], [0], [1], [0, 0, 1, 1], [], []>} : vector<16x32xf32>, vector<32x128xf32>, vector<16x128xf32> -> vector<16x128xf32>
      %c0_13 = arith.constant 0 : index
      %c0_14 = arith.constant 0 : index
      %13 = vector.load %arg4[%c0_13, %c0_14] : memref<1x128xf32, #tpu.memory_space<vmem>>, vector<1x128xf32>
      %14 = vector.broadcast %13 : vector<1x128xf32> to vector<16x128xf32>
      %15 = arith.addf %12, %14 : vector<16x128xf32>
      %cst_15 = arith.constant 5.000000e-01 : f32
      %16 = vector.broadcast %cst_15 : f32 to vector<16x128xf32>
      %17 = arith.mulf %16, %15 : vector<16x128xf32>
      %cst_16 = arith.constant 0.707106769 : f32
      %18 = vector.broadcast %cst_16 : f32 to vector<16x128xf32>
      %19 = arith.mulf %15, %18 : vector<16x128xf32>
      %20 = math.erf %19 : vector<16x128xf32>
      %cst_17 = arith.constant 1.000000e+00 : f32
      %21 = vector.broadcast %cst_17 : f32 to vector<16x128xf32>
      %22 = arith.addf %21, %20 : vector<16x128xf32>
      %23 = arith.mulf %17, %22 : vector<16x128xf32>
      %c0_18 = arith.constant 0 : index
      %c0_19 = arith.constant 0 : index
      %24 = vector.load %arg8[%c0_18, %c0_19] : memref<16x128xf32, #tpu.memory_space<vmem>>, vector<16x128xf32>
      tpu.vector_store %arg8[%c0_18, %c0_19], %23 {strides = array<i32>} : memref<16x128xf32, #tpu.memory_space<vmem>>, vector<16x128xf32>,
    } else {
    }
    %c0 = arith.constant 0 : index
    %c0_1 = arith.constant 0 : index
    %3 = vector.load %arg8[%c0, %c0_1] : memref<16x128xf32, #tpu.memory_space<vmem>>, vector<16x128xf32>
    %c0_2 = arith.constant 0 : index
    %c0_3 = arith.constant 0 : index
    %4 = vector.load %arg5[%c0_2, %c0_3] : memref<128x128xf32, #tpu.memory_space<vmem>>, vector<128x128xf32>
    %cst = arith.constant dense<0.000000e+00> : vector<16x128xf32>
    %5 = tpu.matmul %3, %4, %cst {dimension_numbers = #tpu.dot_dimension_numbers<[1], [0], [0], [1], [0, 0, 1, 1], [], []>} : vector<16x128xf32>, vector<128x128xf32>, vector<16x128xf32> -> vector<16x128xf32>
    %c0_4 = arith.constant 0 : index
    %c0_5 = arith.constant 0 : index
    %6 = vector.load %arg6[%c0_4, %c0_5] : memref<1x128xf32, #tpu.memory_space<vmem>>, vector<1x128xf32>
    %7 = vector.broadcast %6 : vector<1x128xf32> to vector<16x128xf32>
    %8 = arith.addf %5, %7 : vector<16x128xf32>
    %c0_6 = arith.constant 0 : index
    %c0_7 = arith.constant 0 : index
    %9 = vector.load %arg7[%c0_6, %c0_7] : memref<16x128xf32, #tpu.memory_space<vmem>>, vector<16x128xf32>
    tpu.vector_store %arg7[%c0_6, %c0_7], %8 {strides = array<i32>} : memref<16x128xf32, #tpu.memory_space<vmem>>, vector<16x128xf32>,
    return
  }
  func.func @transform_0(%arg0: i32, %arg1: i32) -> (i32, i32) {
    %c0_i32 = arith.constant 0 : i32
    %c0_i32_0 = arith.constant 0 : i32
    return %arg0, %c0_i32 : i32, i32
  }
  func.func @transform_1(%arg0: i32, %arg1: i32) -> (i32, i32) {
    %c0_i32 = arith.constant 0 : i32
    %c0_i32_0 = arith.constant 0 : i32
    %c0_i32_1 = arith.constant 0 : i32
    return %c0_i32, %c0_i32_0 : i32, i32
  }
  func.func @transform_2(%arg0: i32, %arg1: i32) -> (i32, i32) {
    %c0_i32 = arith.constant 0 : i32
    %c0_i32_0 = arith.constant 0 : i32
    %c0_i32_1 = arith.constant 0 : i32
    return %c0_i32, %c0_i32_0 : i32, i32
  }
  func.func @transform_3(%arg0: i32, %arg1: i32) -> (i32, i32) {
    %c0_i32 = arith.constant 0 : i32
    %c0_i32_0 = arith.constant 0 : i32
    return %c0_i32, %arg1 : i32, i32
  }
  func.func @transform_4(%arg0: i32, %arg1: i32) -> (i32, i32) {
    %c0_i32 = arith.constant 0 : i32
    %c0_i32_0 = arith.constant 0 : i32
    return %c0_i32, %arg1 : i32, i32
  }
  func.func @transform_5(%arg0: i32, %arg1: i32) -> (i32, i32) {
    %c0_i32 = arith.constant 0 : i32
    return %arg0, %arg1 : i32, i32
  }
}

</mosaic_0001>

<bundles_post_ra>
// kernel: tpu_custom_call.1
= control target key start
LH: loop header
LB: loop body
LE: loop exit
PB: predicated region body
PF: predicated region fallthrough
CT: control target
= control target key end

     0   :  { %10 = vsyncpa [#allocation4], 0  ;;  %s622_s0 = inlined_call_operand.hbm [shape: f32[16,32], index: 0, kind: input, shape index: {}]   ;;  %s623_s1 = inlined_call_operand.hbm [shape: f32[32,128], index: 1, kind: input, shape index: {}]   ;;  %s624_s2 = inlined_call_operand.vmem [shape: f32[1,128], index: 2, kind: input, shape index: {}]   ;;  %s625_s3 = inlined_call_operand.hbm [shape: f32[128,128], index: 3, kind: input, shape index: {}]   ;;  %s626_s4 = inlined_call_operand.vmem [shape: f32[1,128], index: 4, kind: input, shape index: {}]   ;;  %s627_s5 = inlined_call_operand.hbm [shape: f32[16,128], index: 5, kind: output, shape index: {}]  }
   0x1   :  { %11 = vsyncpa [#allocation7], 0 }
   0x2   :  { %12 = vsyncpa [#allocation5], 0  ;;  %s511_s18 = smov [#allocation6]   ;;  %s512_s20 = smov [#allocation3]  }
   0x3   :  { %s30_s19 = sshll.u32 %s511_s18, 4  ;;  %s18_s21 = sshll.u32 %s512_s20, 4  ;;  %s31_s19 = int_to_ptr.vmem [resolvable:$true] %s30_s19  ;;  %s547_s21 = int_to_ptr.vmem [resolvable:$true] %s18_s21 }
   0x4   :  { %s417_s24 = scalar_lea.hbm %s623_s1, 512 }
   0x5   :  { %p418_p0 = scmp.ne.s32.totalorder %s623_s1, %s417_s24  ;;  %p421_p1 = scmp.lt.u32.totalorder %s417_s24, %s623_s1 }
   0x7   :  { %p423_p2 = pnand %p421_p1, %p418_p0 }
   0x9   :  { %426 = shalt.err (!%p423_p2)
}
   0xa   :  { %s427_s29 = scalar_lea.vmem %s31_s19, 512  ;;  %p432_p4 = scmp.lt.s32.totalorder %s31_s19, %s31_s19 }
   0xb   :  { %p428_p3 = scmp.ne.s32.totalorder %s31_s19, %s427_s29  ;;  %p433_p5 = scmp.lt.s32.totalorder %s427_s29, %s427_s29 }
   0xd   :  { %p434_p6 = por %p433_p5, %p432_p4 }
   0xf   :  { %p435_p7 = pnand %p434_p6, %p428_p3 }
  0x11   :  { %438 = shalt.err (!%p435_p7)
}
  0x12   :  { %s513_s30 = smov 128   ;;  %s514_s6 = smov 8  }
  0x13   :  { %36 = dma.hbm_to_vmem [thread:$0]  %s623_s1, 512, %s31_s19, [#allocation7], %s513_s30, %s513_s30, %s514_s6  }
  0x14   :  { %s439_s11 = scalar_lea.hbm %s622_s0, 256 }
  0x15   :  { %p440_p8 = scmp.ne.s32.totalorder %s622_s0, %s439_s11  ;;  %p443_p9 = scmp.lt.u32.totalorder %s439_s11, %s622_s0 }
  0x17   :  { %p445_p10 = pnand %p443_p9, %p440_p8 }
  0x19   :  { %448 = shalt.err (!%p445_p10)
}
  0x1a   :  { %s449_s16 = scalar_lea.vmem %s547_s21, 256  ;;  %p454_p12 = scmp.lt.s32.totalorder %s547_s21, %s547_s21 }
  0x1b   :  { %p450_p11 = scmp.ne.s32.totalorder %s547_s21, %s449_s16  ;;  %p455_p13 = scmp.lt.s32.totalorder %s449_s16, %s449_s16 }
  0x1d   :  { %p456_p0 = por %p455_p13, %p454_p12 }
  0x1f   :  { %p457_p1 = pnand %p456_p0, %p450_p11 }
  0x21   :  { %460 = shalt.err (!%p457_p1)
}
  0x22   :  { %24 = dma.hbm_to_vmem [thread:$0]  %s622_s0, 256, %s547_s21, [#allocation4], %s513_s30, %s513_s30, %s514_s6  }
  0x23   :  { %s515_s18 = smov [#allocation8]   ;;  %s461_s23 = scalar_lea.hbm %s625_s3, 2048 }
  0x24   :  { %s44_s19 = sshll.u32 %s515_s18, 4  ;;  %p462_p2 = scmp.ne.s32.totalorder %s625_s3, %s461_s23  ;;  %s45_s19 = int_to_ptr.vmem [resolvable:$true] %s44_s19 }
  0x25   :  { %p465_p3 = scmp.lt.u32.totalorder %s461_s23, %s625_s3 }
  0x27   :  { %p467_p4 = pnand %p465_p3, %p462_p2 }
  0x29   :  { %470 = shalt.err (!%p467_p4)
}
  0x2a   :  { %s471_s28 = scalar_lea.vmem %s45_s19, 2048  ;;  %p476_p6 = scmp.lt.s32.totalorder %s45_s19, %s45_s19 }
  0x2b   :  { %p472_p5 = scmp.ne.s32.totalorder %s45_s19, %s471_s28  ;;  %p477_p7 = scmp.lt.s32.totalorder %s471_s28, %s471_s28 }
  0x2d   :  { %p478_p8 = por %p477_p7, %p476_p6 }
  0x2f   :  { %p479_p9 = pnand %p478_p8, %p472_p5 }
  0x31   :  { %482 = shalt.err (!%p479_p9)
}
  0x32   :  { %50 = dma.hbm_to_vmem [thread:$0]  %s625_s3, 2048, %s45_s19, [#allocation7], %s513_s30, %s513_s30, %s514_s6  }
  0x33   :  { %505 = dma.done.wait [#allocation4], 256  }
  0x34   :  { %506 = vsyncadd [#allocation4], 4294967040 }
  0x35   :  { %507 = dma.done.wait [#allocation7], 2560  }
  0x36   :  { %508 = vsyncadd [#allocation7], 4294964736  ;;  %vm79_vm0 = vcmask 261120   ;;  %v68_v0 = vld [vmem:[#allocation6] sm:$0xff]  ;;  %v69_v1 = vld [vmem:[#allocation6 + $0x8] sm:$0xff]  ;;  %s516_s8 = smov [#allocation9]  }
  0x37   :  { %v70_v2 = vld [vmem:[#allocation6 + $0x10] sm:$0xff]  ;;  %v367_v3 = vpack.c.bf16 %v69_v1, %v68_v0  ;;  %v71_v4 = vld [vmem:[#allocation6 + $0x18] sm:$0xff]  ;;  %v175_v7 = vld [vmem:[#allocation8] sm:$0xff]  ;;  %s280_s9 = sshll.u32 %s516_s8, 4  ;;  %s281_s9 = int_to_ptr.vmem [resolvable:$true] %s280_s9 }
  0x38   :  { %v66_v5 = vld [vmem:[#allocation3] sm:$0xff]  ;;  %v371_v6 = vpack.c.bf16 %v71_v4, %v70_v2  ;;  %v176_v8 = vld [vmem:[#allocation8 + $0x8] sm:$0xff]  ;;  %v178_v11 = vld [vmem:[#allocation8 + $0x18] sm:$0xff]  ;;  %s483_s10 = scalar_lea.vmem %s281_s9, 256  ;;  %p488_p11 = scmp.lt.s32.totalorder %s281_s9, %s281_s9 }
  0x39   :  { %329 = vmatprep.mubr.msk.f32.mxu0 %vm79_vm0, %v66_v5  ;;  %v177_v9 = vld [vmem:[#allocation8 + $0x10] sm:$0xff]  ;;  %368 = vmatprep.subr.bf16.mxu0 %v367_v3  ;;  %v375_v10 = vpack.c.bf16 %v176_v8, %v175_v7  ;;  %v179_v13 = vld [vmem:[#allocation8 + $0x20] sm:$0xff]  ;;  %v180_v14 = vld [vmem:[#allocation8 + $0x28] sm:$0xff]  ;;  %p484_p10 = scmp.ne.s32.totalorder %s281_s9, %s483_s10  ;;  %p489_p12 = scmp.lt.s32.totalorder %s483_s10, %s483_s10 }
  0x3a   :  { %370 = vmatpush3.bf16.msra.mxu0 %v367_v3  ;;  %v379_v12 = vpack.c.bf16 %v178_v11, %v177_v9  ;;  %v383_v15 = vpack.c.bf16 %v180_v14, %v179_v13  ;;  %v67_v16 = vld [vmem:[#allocation3 + $0x8] sm:$0xff]  ;;  %v181_v17 = vld [vmem:[#allocation8 + $0x30] sm:$0xff]  ;;  %v183_v20 = vld [vmem:[#allocation8 + $0x40] sm:$0xff] }
  0x3b   :  { %372 = vmatprep.subr.bf16.mxu0 %v371_v6  ;;  %376 = vmatprep.subr.bf16.mxu1 %v375_v10  ;;  %v182_v18 = vld [vmem:[#allocation8 + $0x38] sm:$0xff]  ;;  %v184_v21 = vld [vmem:[#allocation8 + $0x48] sm:$0xff]  ;;  %v185_v23 = vld [vmem:[#allocation8 + $0x50] sm:$0xff]  ;;  %p490_p13 = por %p489_p12, %p488_p11 }
  0x3c   :  { %378 = vmatpush3.bf16.msra.mxu1 %v375_v10  ;;  %v387_v19 = vpack.c.bf16 %v182_v18, %v181_v17  ;;  %v391_v22 = vpack.c.bf16 %v184_v21, %v183_v20  ;;  %v186_v24 = vld [vmem:[#allocation8 + $0x58] sm:$0xff]  ;;  %v187_v26 = vld [vmem:[#allocation8 + $0x60] sm:$0xff]  ;;  %v188_v27 = vld [vmem:[#allocation8 + $0x68] sm:$0xff] }
  0x3d   :  { %380 = vmatprep.subr.bf16.mxu1 %v379_v12  ;;  %v395_v25 = vpack.c.bf16 %v186_v24, %v185_v23  ;;  %v399_v28 = vpack.c.bf16 %v188_v27, %v187_v26  ;;  %v189_v29 = vld [vmem:[#allocation8 + $0x70] sm:$0xff]  ;;  %v190_v30 = vld [vmem:[#allocation8 + $0x78] sm:$0xff]  ;;  %p491_p0 = pnand %p490_p13, %p484_p10 }
  0x3e   :  { %374 = vmatpush3.bf16.msra.mxu0 %v371_v6  ;;  %v403_v31 = vpack.c.bf16 %v190_v30, %v189_v29  ;;  %v293_v32 = vld [vmem:[%s624_s2] ss:$0 sm:$0xff] }
  0x3f   :  { %v296_v47 = vld [vmem:[%s626_s4] ss:$0 sm:$0xff] }
  0x40   :  { %382 = vmatpush3.bf16.msra.mxu1 %v379_v12 }
  0x41   :  { %330 = vmatmul.mubr.msk.f32.vlgmr.msra.gmra.mrb[0].mxu0 %vm79_vm0, %v67_v16  ;;  %384 = vmatprep.subr.bf16.mxu1 %v383_v15 }
  0x44   :  { %386 = vmatpush3.bf16.msra.mxu1 %v383_v15 }
  0x45   :  { %388 = vmatprep.subr.bf16.mxu1 %v387_v19 }
  0x48   :  { %390 = vmatpush3.bf16.msra.mxu1 %v387_v19 }
  0x49   :  { %392 = vmatprep.subr.bf16.mxu1 %v391_v22 }
  0x4c   :  { %394 = vmatpush3.bf16.msra.mxu1 %v391_v22 }
  0x4d   :  { %396 = vmatprep.subr.bf16.mxu1 %v395_v25 }
  0x50   :  { %398 = vmatpush3.bf16.msra.mxu1 %v395_v25 }
  0x51   :  { %400 = vmatprep.subr.bf16.mxu1 %v399_v28 }
  0x54   :  { %402 = vmatpush3.bf16.msra.mxu1 %v399_v28 }
  0x55   :  { %404 = vmatprep.subr.bf16.mxu1 %v403_v31 }
  0x58   :  { %406 = vmatpush3.bf16.msra.mxu1 %v403_v31 }
 0x114   :  { %v331_v33 = vpop.f32.mrb[0].mxu0 }
 0x115   :  { %v158_v34 = vadd.f32 %v331_v33, %v293_v32  ;;  %v152_v35 = vpop.f32.mrb[1].mxu0 }
 0x116   :  { %v153_v36 = vadd.f32 %v293_v32, %v152_v35 }
 0x117   :  { %v164_v37 = vmul.f32 0.70710677, %v158_v34  ;;  %v162_v44 = vmul.f32 0.5, %v158_v34 }
 0x118   :  { %v163_v38 = vmul.f32 0.70710677, %v153_v36  ;;  %v161_v42 = vmul.f32 0.5, %v153_v36 }
 0x119   :  { %413 = verf.f32 %v164_v37 }
 0x11a   :  { %415 = verf.f32 %v163_v38 }
 0x123   :  { %v414_v39 = vpop.eup %413 }
 0x124   :  { %v416_v40 = vpop.eup %415  ;;  %v168_v41 = vadd.f32 1.0, %v414_v39 }
 0x125   :  { %v167_v43 = vadd.f32 1.0, %v416_v40 }
 0x126   :  { %v170_v46 = vmul.f32 %v168_v41, %v162_v44 }
 0x127   :  { %v169_v45 = vmul.f32 %v167_v43, %v161_v42 }
 0x129   :  { %364 = vmatprep.mubr.f32.mxu1 %v169_v45 }
 0x12a   :  { %365 = vmatmul.mubr.f32.vlgmr.msra.gmra.mrb[0].mxu1 %v170_v46 }
 0x1fd   :  { %v366_v48 = vpop.f32.mrb[0].mxu1 }
 0x1fe   :  { %v270_v49 = vadd.f32 %v366_v48, %v296_v47  ;;  %v264_v50 = vpop.f32.mrb[1].mxu1 }
 0x1ff   :  { %v265_v51 = vadd.f32 %v296_v47, %v264_v50 }
 0x200   :  { %274 = vst [vmem:[#allocation9 + $0x8] sm:$0xff] %v270_v49 }
 0x201   :  { %273 = vst [vmem:[#allocation9] sm:$0xff] %v265_v51 }
 0x202   :  { %494 = shalt.err (!%p491_p0)
}
 0x203   :  { %s495_s4 = scalar_lea.hbm %s627_s5, 256 }
 0x204   :  { %p496_p1 = scmp.ne.s32.totalorder %s627_s5, %s495_s4  ;;  %p499_p2 = scmp.lt.u32.totalorder %s495_s4, %s627_s5 }
 0x206   :  { %p501_p3 = pnand %p499_p2, %p496_p1 }
 0x208   :  { %504 = shalt.err (!%p501_p3)
}
 0x209   :  { %286 = dma.vmem_to_hbm [thread:$0]  %s281_s9, 256, %s627_s5, [#allocation5], %s513_s30, %s513_s30, %s514_s6  }
 0x20a   :  { %509 = dma.done.wait [#allocation5], 256  }
 0x20b   :  { %510 = vsyncadd [#allocation5], 4294967040 }
 0x20c   :  { %290 = vsyncpa [#allocation4], 1 }
 0x20d   :  { %291 = vsyncpa [#allocation7], 1 }
 0x20e   :  { %292 = vsyncpa [#allocation5], 1 }

// kernel: tpu_custom_call.1
= control target key start
LH: loop header
LB: loop body
LE: loop exit
PB: predicated region body
PF: predicated region fallthrough
CT: control target
= control target key end

     0   :  { %10 = vsyncpa [#allocation4], 0  ;;  %s622_s0 = inlined_call_operand.hbm [shape: f32[16,32], index: 0, kind: input, shape index: {}]   ;;  %s623_s1 = inlined_call_operand.hbm [shape: f32[32,128], index: 1, kind: input, shape index: {}]   ;;  %s624_s2 = inlined_call_operand.vmem [shape: f32[1,128], index: 2, kind: input, shape index: {}]   ;;  %s625_s3 = inlined_call_operand.hbm [shape: f32[128,128], index: 3, kind: input, shape index: {}]   ;;  %s626_s4 = inlined_call_operand.vmem [shape: f32[1,128], index: 4, kind: input, shape index: {}]   ;;  %s627_s5 = inlined_call_operand.hbm [shape: f32[16,128], index: 5, kind: output, shape index: {}]  }
   0x1   :  { %11 = vsyncpa [#allocation7], 0 }
   0x2   :  { %12 = vsyncpa [#allocation5], 0  ;;  %s511_s18 = smov [#allocation6]   ;;  %s512_s20 = smov [#allocation3]  }
   0x3   :  { %s30_s19 = sshll.u32 %s511_s18, 4  ;;  %s18_s21 = sshll.u32 %s512_s20, 4  ;;  %s31_s19 = int_to_ptr.vmem [resolvable:$true] %s30_s19  ;;  %s547_s21 = int_to_ptr.vmem [resolvable:$true] %s18_s21 }
   0x4   :  { %s417_s24 = scalar_lea.hbm %s623_s1, 512 }
   0x5   :  { %p418_p0 = scmp.ne.s32.totalorder %s623_s1, %s417_s24  ;;  %p421_p1 = scmp.lt.u32.totalorder %s417_s24, %s623_s1 }
   0x7   :  { %p423_p2 = pnand %p421_p1, %p418_p0 }
   0x9   :  { %426 = shalt.err (!%p423_p2)
}
   0xa   :  { %s427_s29 = scalar_lea.vmem %s31_s19, 512  ;;  %p432_p4 = scmp.lt.s32.totalorder %s31_s19, %s31_s19 }
   0xb   :  { %p428_p3 = scmp.ne.s32.totalorder %s31_s19, %s427_s29  ;;  %p433_p5 = scmp.lt.s32.totalorder %s427_s29, %s427_s29 }
   0xd   :  { %p434_p6 = por %p433_p5, %p432_p4 }
   0xf   :  { %p435_p7 = pnand %p434_p6, %p428_p3 }
  0x11   :  { %438 = shalt.err (!%p435_p7)
}
  0x12   :  { %s513_s30 = smov 128   ;;  %s514_s6 = smov 8  }
  0x13   :  { %36 = dma.hbm_to_vmem [thread:$0]  %s623_s1, 512, %s31_s19, [#allocation7], %s513_s30, %s513_s30, %s514_s6  }
  0x14   :  { %s439_s11 = scalar_lea.hbm %s622_s0, 256 }
  0x15   :  { %p440_p8 = scmp.ne.s32.totalorder %s622_s0, %s439_s11  ;;  %p443_p9 = scmp.lt.u32.totalorder %s439_s11, %s622_s0 }
  0x17   :  { %p445_p10 = pnand %p443_p9, %p440_p8 }
  0x19   :  { %448 = shalt.err (!%p445_p10)
}
  0x1a   :  { %s449_s16 = scalar_lea.vmem %s547_s21, 256  ;;  %p454_p12 = scmp.lt.s32.totalorder %s547_s21, %s547_s21 }
  0x1b   :  { %p450_p11 = scmp.ne.s32.totalorder %s547_s21, %s449_s16  ;;  %p455_p13 = scmp.lt.s32.totalorder %s449_s16, %s449_s16 }
  0x1d   :  { %p456_p0 = por %p455_p13, %p454_p12 }
  0x1f   :  { %p457_p1 = pnand %p456_p0, %p450_p11 }
  0x21   :  { %460 = shalt.err (!%p457_p1)
}
  0x22   :  { %24 = dma.hbm_to_vmem [thread:$0]  %s622_s0, 256, %s547_s21, [#allocation4], %s513_s30, %s513_s30, %s514_s6  }
  0x23   :  { %s515_s18 = smov [#allocation8]   ;;  %s461_s23 = scalar_lea.hbm %s625_s3, 2048 }
  0x24   :  { %s44_s19 = sshll.u32 %s515_s18, 4  ;;  %p462_p2 = scmp.ne.s32.totalorder %s625_s3, %s461_s23  ;;  %s45_s19 = int_to_ptr.vmem [resolvable:$true] %s44_s19 }
  0x25   :  { %p465_p3 = scmp.lt.u32.totalorder %s461_s23, %s625_s3 }
  0x27   :  { %p467_p4 = pnand %p465_p3, %p462_p2 }
  0x29   :  { %470 = shalt.err (!%p467_p4)
}
  0x2a   :  { %s471_s28 = scalar_lea.vmem %s45_s19, 2048  ;;  %p476_p6 = scmp.lt.s32.totalorder %s45_s19, %s45_s19 }
  0x2b   :  { %p472_p5 = scmp.ne.s32.totalorder %s45_s19, %s471_s28  ;;  %p477_p7 = scmp.lt.s32.totalorder %s471_s28, %s471_s28 }
  0x2d   :  { %p478_p8 = por %p477_p7, %p476_p6 }
  0x2f   :  { %p479_p9 = pnand %p478_p8, %p472_p5 }
  0x31   :  { %482 = shalt.err (!%p479_p9)
}
  0x32   :  { %50 = dma.hbm_to_vmem [thread:$0]  %s625_s3, 2048, %s45_s19, [#allocation7], %s513_s30, %s513_s30, %s514_s6  }
  0x33   :  { %505 = dma.done.wait [#allocation4], 256  }
  0x34   :  { %506 = vsyncadd [#allocation4], 4294967040 }
  0x35   :  { %507 = dma.done.wait [#allocation7], 2560  }
  0x36   :  { %508 = vsyncadd [#allocation7], 4294964736  ;;  %vm79_vm0 = vcmask 261120   ;;  %v68_v0 = vld [vmem:[#allocation6] sm:$0xff]  ;;  %v69_v1 = vld [vmem:[#allocation6 + $0x8] sm:$0xff]  ;;  %s516_s8 = smov [#allocation9]  }
  0x37   :  { %v70_v2 = vld [vmem:[#allocation6 + $0x10] sm:$0xff]  ;;  %v367_v3 = vpack.c.bf16 %v69_v1, %v68_v0  ;;  %v71_v4 = vld [vmem:[#allocation6 + $0x18] sm:$0xff]  ;;  %v175_v7 = vld [vmem:[#allocation8] sm:$0xff]  ;;  %s280_s9 = sshll.u32 %s516_s8, 4  ;;  %s281_s9 = int_to_ptr.vmem [resolvable:$true] %s280_s9 }
  0x38   :  { %v66_v5 = vld [vmem:[#allocation3] sm:$0xff]  ;;  %v371_v6 = vpack.c.bf16 %v71_v4, %v70_v2  ;;  %v176_v8 = vld [vmem:[#allocation8 + $0x8] sm:$0xff]  ;;  %v178_v11 = vld [vmem:[#allocation8 + $0x18] sm:$0xff]  ;;  %s483_s10 = scalar_lea.vmem %s281_s9, 256  ;;  %p488_p11 = scmp.lt.s32.totalorder %s281_s9, %s281_s9 }
  0x39   :  { %329 = vmatprep.mubr.msk.f32.mxu0 %vm79_vm0, %v66_v5  ;;  %v177_v9 = vld [vmem:[#allocation8 + $0x10] sm:$0xff]  ;;  %368 = vmatprep.subr.bf16.mxu0 %v367_v3  ;;  %v375_v10 = vpack.c.bf16 %v176_v8, %v175_v7  ;;  %v179_v13 = vld [vmem:[#allocation8 + $0x20] sm:$0xff]  ;;  %v180_v14 = vld [vmem:[#allocation8 + $0x28] sm:$0xff]  ;;  %p484_p10 = scmp.ne.s32.totalorder %s281_s9, %s483_s10  ;;  %p489_p12 = scmp.lt.s32.totalorder %s483_s10, %s483_s10 }
  0x3a   :  { %370 = vmatpush3.bf16.msra.mxu0 %v367_v3  ;;  %v379_v12 = vpack.c.bf16 %v178_v11, %v177_v9  ;;  %v383_v15 = vpack.c.bf16 %v180_v14, %v179_v13  ;;  %v67_v16 = vld [vmem:[#allocation3 + $0x8] sm:$0xff]  ;;  %v181_v17 = vld [vmem:[#allocation8 + $0x30] sm:$0xff]  ;;  %v183_v20 = vld [vmem:[#allocation8 + $0x40] sm:$0xff] }
  0x3b   :  { %372 = vmatprep.subr.bf16.mxu0 %v371_v6  ;;  %376 = vmatprep.subr.bf16.mxu1 %v375_v10  ;;  %v182_v18 = vld [vmem:[#allocation8 + $0x38] sm:$0xff]  ;;  %v184_v21 = vld [vmem:[#allocation8 + $0x48] sm:$0xff]  ;;  %v185_v23 = vld [vmem:[#allocation8 + $0x50] sm:$0xff]  ;;  %p490_p13 = por %p489_p12, %p488_p11 }
  0x3c   :  { %378 = vmatpush3.bf16.msra.mxu1 %v375_v10  ;;  %v387_v19 = vpack.c.bf16 %v182_v18, %v181_v17  ;;  %v391_v22 = vpack.c.bf16 %v184_v21, %v183_v20  ;;  %v186_v24 = vld [vmem:[#allocation8 + $0x58] sm:$0xff]  ;;  %v187_v26 = vld [vmem:[#allocation8 + $0x60] sm:$0xff]  ;;  %v188_v27 = vld [vmem:[#allocation8 + $0x68] sm:$0xff] }
  0x3d   :  { %380 = vmatprep.subr.bf16.mxu1 %v379_v12  ;;  %v395_v25 = vpack.c.bf16 %v186_v24, %v185_v23  ;;  %v399_v28 = vpack.c.bf16 %v188_v27, %v187_v26  ;;  %v189_v29 = vld [vmem:[#allocation8 + $0x70] sm:$0xff]  ;;  %v190_v30 = vld [vmem:[#allocation8 + $0x78] sm:$0xff]  ;;  %p491_p0 = pnand %p490_p13, %p484_p10 }
  0x3e   :  { %374 = vmatpush3.bf16.msra.mxu0 %v371_v6  ;;  %v403_v31 = vpack.c.bf16 %v190_v30, %v189_v29  ;;  %v293_v32 = vld [vmem:[%s624_s2] ss:$0 sm:$0xff] }
  0x3f   :  { %v296_v47 = vld [vmem:[%s626_s4] ss:$0 sm:$0xff] }
  0x40   :  { %382 = vmatpush3.bf16.msra.mxu1 %v379_v12 }
  0x41   :  { %330 = vmatmul.mubr.msk.f32.vlgmr.msra.gmra.mrb[0].mxu0 %vm79_vm0, %v67_v16  ;;  %384 = vmatprep.subr.bf16.mxu1 %v383_v15 }
  0x44   :  { %386 = vmatpush3.bf16.msra.mxu1 %v383_v15 }
  0x45   :  { %388 = vmatprep.subr.bf16.mxu1 %v387_v19 }
  0x48   :  { %390 = vmatpush3.bf16.msra.mxu1 %v387_v19 }
  0x49   :  { %392 = vmatprep.subr.bf16.mxu1 %v391_v22 }
  0x4c   :  { %394 = vmatpush3.bf16.msra.mxu1 %v391_v22 }
  0x4d   :  { %396 = vmatprep.subr.bf16.mxu1 %v395_v25 }
  0x50   :  { %398 = vmatpush3.bf16.msra.mxu1 %v395_v25 }
  0x51   :  { %400 = vmatprep.subr.bf16.mxu1 %v399_v28 }
  0x54   :  { %402 = vmatpush3.bf16.msra.mxu1 %v399_v28 }
  0x55   :  { %404 = vmatprep.subr.bf16.mxu1 %v403_v31 }
  0x58   :  { %406 = vmatpush3.bf16.msra.mxu1 %v403_v31 }
 0x114   :  { %v331_v33 = vpop.f32.mrb[0].mxu0 }
 0x115   :  { %v158_v34 = vadd.f32 %v331_v33, %v293_v32  ;;  %v152_v35 = vpop.f32.mrb[1].mxu0 }
 0x116   :  { %v153_v36 = vadd.f32 %v293_v32, %v152_v35 }
 0x117   :  { %v164_v37 = vmul.f32 0.70710677, %v158_v34  ;;  %v162_v44 = vmul.f32 0.5, %v158_v34 }
 0x118   :  { %v163_v38 = vmul.f32 0.70710677, %v153_v36  ;;  %v161_v42 = vmul.f32 0.5, %v153_v36 }
 0x119   :  { %413 = verf.f32 %v164_v37 }
 0x11a   :  { %415 = verf.f32 %v163_v38 }
 0x123   :  { %v414_v39 = vpop.eup %413 }
 0x124   :  { %v416_v40 = vpop.eup %415  ;;  %v168_v41 = vadd.f32 1.0, %v414_v39 }
 0x125   :  { %v167_v43 = vadd.f32 1.0, %v416_v40 }
 0x126   :  { %v170_v46 = vmul.f32 %v168_v41, %v162_v44 }
 0x127   :  { %v169_v45 = vmul.f32 %v167_v43, %v161_v42 }
 0x129   :  { %364 = vmatprep.mubr.f32.mxu1 %v169_v45 }
 0x12a   :  { %365 = vmatmul.mubr.f32.vlgmr.msra.gmra.mrb[0].mxu1 %v170_v46 }
 0x1fd   :  { %v366_v48 = vpop.f32.mrb[0].mxu1 }
 0x1fe   :  { %v270_v49 = vadd.f32 %v366_v48, %v296_v47  ;;  %v264_v50 = vpop.f32.mrb[1].mxu1 }
 0x1ff   :  { %v265_v51 = vadd.f32 %v296_v47, %v264_v50 }
 0x200   :  { %274 = vst [vmem:[#allocation9 + $0x8] sm:$0xff] %v270_v49 }
 0x201   :  { %273 = vst [vmem:[#allocation9] sm:$0xff] %v265_v51 }
 0x202   :  { %494 = shalt.err (!%p491_p0)
}
 0x203   :  { %s495_s4 = scalar_lea.hbm %s627_s5, 256 }
 0x204   :  { %p496_p1 = scmp.ne.s32.totalorder %s627_s5, %s495_s4  ;;  %p499_p2 = scmp.lt.u32.totalorder %s495_s4, %s627_s5 }
 0x206   :  { %p501_p3 = pnand %p499_p2, %p496_p1 }
 0x208   :  { %504 = shalt.err (!%p501_p3)
}
 0x209   :  { %286 = dma.vmem_to_hbm [thread:$0]  %s281_s9, 256, %s627_s5, [#allocation5], %s513_s30, %s513_s30, %s514_s6  }
 0x20a   :  { %509 = dma.done.wait [#allocation5], 256  }
 0x20b   :  { %510 = vsyncadd [#allocation5], 4294967040 }
 0x20c   :  { %290 = vsyncpa [#allocation4], 1 }
 0x20d   :  { %291 = vsyncpa [#allocation7], 1 }
 0x20e   :  { %292 = vsyncpa [#allocation5], 1 }

</bundles_post_ra>
